<compile_context>
chip_gen: v7x
topology: tpu7x:2x2x1
jax: 0.10.0
libtpu: 0.0.40
codegen_flags: <defaults>
</compile_context>

<pallas_src>
import functools

import jax
import jax.numpy as jnp
from jax.experimental import pallas as pl
from jax.experimental.pallas import tpu as pltpu


# ---------------------------------------------------------------------------
# Fused DownBlock kernel (one batch image per grid step, channels-first)
# ---------------------------------------------------------------------------
def _downblock_kernel(x_ref, w1t_ref, b1_ref, w2t_ref, b2_ref, o_ref,
                      mid_ref, slab2_ref, *, H, W, Cin, Cmid, Cout):
    Wp = W + 2          # padded row width
    M = H * Wp          # flattened output positions (incl. 2 garbage cols/row)
    R = (H + 3) * Wp    # flattened padded frame length

    # Valid-output-lane mask: lane o maps to w = o % Wp; w >= W is the
    # wrap-around garbage produced by the shifted-row trick.
    col = jax.lax.broadcasted_iota(jnp.int32, (1, M), 1) % Wp
    valid = col < W

    # ---- ConvBlock 1: conv3x3 (BN scale pre-folded) -> ReLU -> +bias -------
    # im2col slab (9*Cin, M) from 9 lane-shifted views of the padded frame;
    # single MXU matmul with K = 9*Cin.
    taps = [x_ref[:, (kh * Wp + kw):(kh * Wp + kw) + M]
            for kh in range(3) for kw in range(3)]
    slab1 = jnp.concatenate(taps, axis=0)                     # (9*Cin, M) bf16
    acc1 = jnp.dot(w1t_ref[...], slab1,
                   preferred_element_type=jnp.float32)        # (Cmid, M) f32
    y1 = jnp.maximum(acc1, 0.0) + b1_ref[...]                 # ReLU + folded BN bias
    y1 = jnp.where(valid, y1, 0.0)                            # zero the pad lanes

    # Stage the zero-padded intermediate in VMEM only (never touches HBM).
    # mid[(h+1)*Wp + (w+1)] = y1[h*Wp + w]; the masked garbage lanes land
    # exactly on the zero-padding positions conv2 expects, so only the halo
    # lanes outside [Wp+1, Wp+1+M) need explicit zeroing (done every step —
    # cheap, and safe under any megacore grid sharding).
    mid_ref[:, 0:Wp + 1] = jnp.zeros((Cmid, Wp + 1), mid_ref.dtype)
    mid_ref[:, Wp + 1 + M:R] = jnp.zeros((Cmid, R - (Wp + 1 + M)), mid_ref.dtype)
    mid_ref[:, Wp + 1:Wp + 1 + M] = y1.astype(mid_ref.dtype)

    # ---- ConvBlock 2: conv3x3 -> ReLU -> +bias ------------------------------
    # im2col slab (9*Cmid, M) in VMEM; each tap block starts at a sublane
    # offset that is a multiple of Cmid = 32 (bf16-packing aligned stores).
    for t in range(9):
        kh, kw = t // 3, t % 3
        off = kh * Wp + kw
        slab2_ref[t * Cmid:(t + 1) * Cmid, :] = mid_ref[:, off:off + M]
    acc2 = jnp.dot(w2t_ref[...], slab2_ref[...],
                   preferred_element_type=jnp.float32)        # (Cout, M) f32
    y2 = jnp.maximum(acc2, 0.0) + b2_ref[...]
    o_ref[...] = jnp.where(valid, y2, 0.0).astype(o_ref.dtype)  # lane-dense (Cout, M)


# ---------------------------------------------------------------------------
# Wrapper: layout glue (NCHW <-> channels-first padded row-flattened) + call
# ---------------------------------------------------------------------------
def downblock_forward(params, x_nchw):
    w1t, b1 = params["w1t"], params["b1"]   # (Cmid, 9*Cin) bf16, (Cmid, 1) f32
    w2t, b2 = params["w2t"], params["b2"]   # (Cout, 9*Cmid) bf16, (Cout, 1) f32
    N, Cin, H, W = x_nchw.shape
    Cmid, Cout = w1t.shape[0], w2t.shape[0]
    Wp = W + 2
    M = H * Wp
    R = (H + 3) * Wp                        # 1 top + 2 bottom pad rows

    # NCHW is already channels-first: cast to bf16 FIRST (halve layout-glue
    # bytes), pad (top=1, bottom=2, left=1, right=1), flatten the spatial dims.
    xb = x_nchw.astype(jnp.bfloat16)
    xp = jnp.pad(xb, ((0, 0), (0, 0), (1, 2), (1, 1)))
    xf = xp.reshape(N, Cin, R)

    kernel = functools.partial(_downblock_kernel,
                               H=H, W=W, Cin=Cin, Cmid=Cmid, Cout=Cout)

    out = pl.pallas_call(
        kernel,
        out_shape=jax.ShapeDtypeStruct((N, Cout, M), jnp.float32),
        grid=(N,),
        in_specs=[
            pl.BlockSpec((None, Cin, R), lambda n: (n, 0, 0)),
            pl.BlockSpec((Cmid, 9 * Cin), lambda n: (0, 0)),
            pl.BlockSpec((Cmid, 1), lambda n: (0, 0)),
            pl.BlockSpec((Cout, 9 * Cmid), lambda n: (0, 0)),
            pl.BlockSpec((Cout, 1), lambda n: (0, 0)),
        ],
        out_specs=pl.BlockSpec((None, Cout, M), lambda n: (n, 0, 0)),
        scratch_shapes=[
            pltpu.VMEM((Cmid, R), jnp.bfloat16),       # padded intermediate
            pltpu.VMEM((9 * Cmid, M), jnp.bfloat16),   # conv2 im2col slab
        ],
        compiler_params=pltpu.CompilerParams(
            dimension_semantics=("parallel",)),
    )(xf, w1t, b1, w2t, b2)

    # (N, Cout, H*Wp) -> drop the 2 wrap-around columns per row -> NCHW.
    return out.reshape(N, Cout, H, Wp)[:, :, :, :W]


# ---------------------------------------------------------------------------
# Parameter init (Conv weights + BatchNorm running stats, BN folded)
# ---------------------------------------------------------------------------
def init_downblock_params(key, in_channels, out_channels, k=3, eps=1e-5):
    def convblock(key, cin, cout):
        kw_, kg, kb, km, kv = jax.random.split(key, 5)
        fan_in = k * k * cin
        w = jax.random.normal(kw_, (k, k, cin, cout), jnp.float32) / jnp.sqrt(fan_in)
        gamma = jax.random.uniform(kg, (cout,), jnp.float32, 0.8, 1.2)
        beta = 0.05 * jax.random.normal(kb, (cout,), jnp.float32)
        rmean = 0.05 * jax.random.normal(km, (cout,), jnp.float32)
        rvar = jax.random.uniform(kv, (cout,), jnp.float32, 0.8, 1.2)
        scale = gamma / jnp.sqrt(rvar + eps)     # > 0 under this init
        bias = beta - rmean * scale
        # Fold the (strictly positive) BN scale into the conv weights across
        # the ReLU:  relu(x @ W) * s + b == relu(x @ (W * s)) + b   for s > 0.
        # Weights stored transposed, (cout, 9*cin): the kernel computes
        # y^T = Wt @ im2col^T, giving a lane-dense channels-first output.
        wt = (w * scale).reshape(k * k * cin, cout).T            # (cout, 9*cin)
        return wt.astype(jnp.bfloat16), bias.reshape(cout, 1).astype(jnp.float32)

    k1, k2 = jax.random.split(key)
    w1t, b1 = convblock(k1, in_channels, out_channels)
    w2t, b2 = convblock(k2, out_channels, out_channels)
    return dict(w1t=w1t, b1=b1, w2t=w2t, b2=b2)


# ---------------------------------------------------------------------------
# Pure-JAX reference (same folded params / same bf16 rounding points, NCHW)
# ---------------------------------------------------------------------------
def downblock_reference(params, x_nchw):
    w1t, b1, w2t, b2 = params["w1t"], params["b1"], params["w2t"], params["b2"]

    def conv_block(x, wt, b):                       # x: (N, cin, H, W) bf16
        N, cin, H, W = x.shape
        cout = wt.shape[0]
        xp = jnp.pad(x, ((0, 0), (0, 0), (1, 1), (1, 1)))
        taps = [xp[:, :, kh:kh + H, kw:kw + W]
                for kh in range(3) for kw in range(3)]
        patches = jnp.concatenate(taps, axis=1).reshape(N, 9 * cin, H * W)
        y = jnp.einsum("ok,nkp->nop", wt, patches,
                       preferred_element_type=jnp.float32)
        y = jnp.maximum(y, 0.0) + b[None, :, :]
        return y.reshape(N, cout, H, W)

    x = x_nchw.astype(jnp.bfloat16)
    y1 = conv_block(x, w1t, b1).astype(jnp.bfloat16)
    return conv_block(y1, w2t, b2)                  # (N, cout, H, W) f32


if __name__ == "__main__":
    key = jax.random.PRNGKey(0)
    kp, kx = jax.random.split(key)

    N, in_channels, out_channels, H, W = 2, 4, 32, 16, 16
    params = init_downblock_params(kp, in_channels, out_channels)
    x = jax.random.normal(kx, (N, in_channels, H, W), jnp.float32)

    fwd = jax.jit(lambda inp: downblock_forward(params, inp))
    out = fwd(x)
    jax.block_until_ready(out)

    assert out.shape == (N, out_channels, H, W), out.shape
    assert bool(jnp.all(jnp.isfinite(out)))

    ref = jax.jit(lambda inp: downblock_reference(params, inp))(x)
    max_err = float(jnp.max(jnp.abs(out - ref)))
    assert bool(jnp.allclose(out, ref, atol=1e-2, rtol=1e-2)), max_err

    print("KERNEL_OK")
</pallas_src>

<mosaic_0001>
module attributes {stable_mosaic.version = 11 : i64} {
  func.func @_downblock_kernel(%arg0: i32, %arg1: memref<1x4x342xbf16, #tpu.memory_space<vmem>>, %arg2: memref<32x36xbf16, #tpu.memory_space<vmem>>, %arg3: memref<32x1xf32, #tpu.memory_space<vmem>>, %arg4: memref<32x288xbf16, #tpu.memory_space<vmem>>, %arg5: memref<32x1xf32, #tpu.memory_space<vmem>>, %arg6: memref<1x32x288xf32, #tpu.memory_space<vmem>>, %arg7: memref<32x342xbf16, #tpu.memory_space<vmem>>, %arg8: memref<288x288xbf16, #tpu.memory_space<vmem>>) attributes {dimension_semantics = [#tpu.dimension_semantics<parallel>], iteration_bounds = array<i64: 2>, scalar_prefetch = 0 : i64, scratch_operands = 2 : i64, tpu.core_type = #tpu.core_type<tc>, window_params = [{transform_indices = @transform_0, window_bounds = array<i64: 1, 4, 342>}, {pipeline_mode = #tpu.pipeline_mode<synchronous>, transform_indices = @transform_1, window_bounds = array<i64: 32, 36>}, {pipeline_mode = #tpu.pipeline_mode<synchronous>, transform_indices = @transform_2, window_bounds = array<i64: 32, 1>}, {pipeline_mode = #tpu.pipeline_mode<synchronous>, transform_indices = @transform_3, window_bounds = array<i64: 32, 288>}, {pipeline_mode = #tpu.pipeline_mode<synchronous>, transform_indices = @transform_4, window_bounds = array<i64: 32, 1>}, {transform_indices = @transform_5, window_bounds = array<i64: 1, 32, 288>}]} {
    %0 = tpu.iota {dimensions = array<i32: 1>} : vector<1x288xi32>
    %c18_i32 = arith.constant 18 : i32
    %c0_i32 = arith.constant 0 : i32
    %1 = arith.cmpi eq, %c18_i32, %c0_i32 : i32
    %c1_i32 = arith.constant 1 : i32
    %2 = arith.select %1, %c1_i32, %c18_i32 : i32
    %3 = vector.broadcast %2 : i32 to vector<1x288xi32>
    %4 = arith.remsi %0, %3 : vector<1x288xi32>
    %c0_i32_0 = arith.constant 0 : i32
    %5 = vector.broadcast %c0_i32_0 : i32 to vector<1x288xi32>
    %6 = arith.cmpi ne, %4, %5 : vector<1x288xi32>
    %c0_i32_1 = arith.constant 0 : i32
    %7 = vector.broadcast %c0_i32_1 : i32 to vector<1x288xi32>
    %8 = arith.cmpi slt, %4, %7 : vector<1x288xi32>
    %c0_i32_2 = arith.constant 0 : i32
    %9 = arith.cmpi slt, %2, %c0_i32_2 : i32
    %10 = vector.broadcast %9 : i1 to vector<1x288xi1>
    %11 = vector.broadcast %10 : vector<1x288xi1> to vector<1x288xi1>
    %12 = arith.xori %8, %11 : vector<1x288xi1>
    %13 = arith.andi %12, %6 : vector<1x288xi1>
    %14 = vector.broadcast %2 : i32 to vector<1x288xi32>
    %15 = arith.addi %4, %14 : vector<1x288xi32>
    %16 = arith.select %13, %15, %4 : vector<1x288xi1>, vector<1x288xi32>
    %c16_i32 = arith.constant 16 : i32
    %17 = vector.broadcast %c16_i32 : i32 to vector<1x288xi32>
    %18 = arith.cmpi slt, %16, %17 : vector<1x288xi32>
    %c0 = arith.constant 0 : index
    %c0_3 = arith.constant 0 : index
    %c0_4 = arith.constant 0 : index
    %19 = vector.load %arg1[%c0, %c0_3, %c0_4] : memref<1x4x342xbf16, #tpu.memory_space<vmem>>, vector<1x4x288xbf16>
    %20 = vector.shape_cast %19 : vector<1x4x288xbf16> to vector<4x288xbf16>
    %c0_5 = arith.constant 0 : index
    %c0_6 = arith.constant 0 : index
    %c1 = arith.constant 1 : index
    %21 = vector.load %arg1[%c0_5, %c0_6, %c1] : memref<1x4x342xbf16, #tpu.memory_space<vmem>>, vector<1x4x288xbf16>
    %22 = vector.shape_cast %21 : vector<1x4x288xbf16> to vector<4x288xbf16>
    %c0_7 = arith.constant 0 : index
    %c0_8 = arith.constant 0 : index
    %c2 = arith.constant 2 : index
    %23 = vector.load %arg1[%c0_7, %c0_8, %c2] : memref<1x4x342xbf16, #tpu.memory_space<vmem>>, vector<1x4x288xbf16>
    %24 = vector.shape_cast %23 : vector<1x4x288xbf16> to vector<4x288xbf16>
    %c0_9 = arith.constant 0 : index
    %c0_10 = arith.constant 0 : index
    %c18 = arith.constant 18 : index
    %25 = vector.load %arg1[%c0_9, %c0_10, %c18] : memref<1x4x342xbf16, #tpu.memory_space<vmem>>, vector<1x4x288xbf16>
    %26 = vector.shape_cast %25 : vector<1x4x288xbf16> to vector<4x288xbf16>
    %c0_11 = arith.constant 0 : index
    %c0_12 = arith.constant 0 : index
    %c19 = arith.constant 19 : index
    %27 = vector.load %arg1[%c0_11, %c0_12, %c19] : memref<1x4x342xbf16, #tpu.memory_space<vmem>>, vector<1x4x288xbf16>
    %28 = vector.shape_cast %27 : vector<1x4x288xbf16> to vector<4x288xbf16>
    %c0_13 = arith.constant 0 : index
    %c0_14 = arith.constant 0 : index
    %c20 = arith.constant 20 : index
    %29 = vector.load %arg1[%c0_13, %c0_14, %c20] : memref<1x4x342xbf16, #tpu.memory_space<vmem>>, vector<1x4x288xbf16>
    %30 = vector.shape_cast %29 : vector<1x4x288xbf16> to vector<4x288xbf16>
    %c0_15 = arith.constant 0 : index
    %c0_16 = arith.constant 0 : index
    %c36 = arith.constant 36 : index
    %31 = vector.load %arg1[%c0_15, %c0_16, %c36] : memref<1x4x342xbf16, #tpu.memory_space<vmem>>, vector<1x4x288xbf16>
    %32 = vector.shape_cast %31 : vector<1x4x288xbf16> to vector<4x288xbf16>
    %c0_17 = arith.constant 0 : index
    %c0_18 = arith.constant 0 : index
    %c37 = arith.constant 37 : index
    %33 = vector.load %arg1[%c0_17, %c0_18, %c37] : memref<1x4x342xbf16, #tpu.memory_space<vmem>>, vector<1x4x288xbf16>
    %34 = vector.shape_cast %33 : vector<1x4x288xbf16> to vector<4x288xbf16>
    %c0_19 = arith.constant 0 : index
    %c0_20 = arith.constant 0 : index
    %c38 = arith.constant 38 : index
    %35 = vector.load %arg1[%c0_19, %c0_20, %c38] : memref<1x4x342xbf16, #tpu.memory_space<vmem>>, vector<1x4x288xbf16>
    %36 = vector.shape_cast %35 : vector<1x4x288xbf16> to vector<4x288xbf16>
    %37 = tpu.concatenate %20, %22, %24, %26, %28, %30, %32, %34, %36 in 0 : vector<4x288xbf16>, vector<4x288xbf16>, vector<4x288xbf16>, vector<4x288xbf16>, vector<4x288xbf16>, vector<4x288xbf16>, vector<4x288xbf16>, vector<4x288xbf16>, vector<4x288xbf16> -> vector<36x288xbf16>
    %c0_21 = arith.constant 0 : index
    %c0_22 = arith.constant 0 : index
    %38 = vector.load %arg2[%c0_21, %c0_22] : memref<32x36xbf16, #tpu.memory_space<vmem>>, vector<32x36xbf16>
    %cst = arith.constant dense<0.000000e+00> : vector<32x288xf32>
    %39 = tpu.matmul %38, %37, %cst {dimension_numbers = #tpu.dot_dimension_numbers<[1], [0], [0], [1], [0, 0, 1, 1], [], []>} : vector<32x36xbf16>, vector<36x288xbf16>, vector<32x288xf32> -> vector<32x288xf32>
    %cst_23 = arith.constant 0.000000e+00 : f32
    %40 = vector.broadcast %cst_23 : f32 to vector<32x288xf32>
    %41 = arith.maximumf %39, %40 : vector<32x288xf32>
    %c0_24 = arith.constant 0 : index
    %c0_25 = arith.constant 0 : index
    %42 = vector.load %arg3[%c0_24, %c0_25] : memref<32x1xf32, #tpu.memory_space<vmem>>, vector<32x1xf32>
    %43 = vector.broadcast %42 : vector<32x1xf32> to vector<32x288xf32>
    %44 = arith.addf %41, %43 : vector<32x288xf32>
    %cst_26 = arith.constant 0.000000e+00 : f32
    %45 = vector.shape_cast %18 : vector<1x288xi1> to vector<1x288xi1>
    %46 = vector.broadcast %45 : vector<1x288xi1> to vector<32x288xi1>
    %47 = vector.broadcast %cst_26 : f32 to vector<32x288xf32>
    %48 = arith.select %46, %44, %47 : vector<32x288xi1>, vector<32x288xf32>
    %cst_27 = arith.constant 0.000000e+00 : bf16
    %49 = vector.broadcast %cst_27 : bf16 to vector<32x19xbf16>
    %c0_28 = arith.constant 0 : index
    %c0_29 = arith.constant 0 : index
    %50 = vector.load %arg7[%c0_28, %c0_29] : memref<32x342xbf16, #tpu.memory_space<vmem>>, vector<32x19xbf16>
    tpu.vector_store %arg7[%c0_28, %c0_29], %49 {strides = array<i32>} : memref<32x342xbf16, #tpu.memory_space<vmem>>, vector<32x19xbf16>,
    %cst_30 = arith.constant 0.000000e+00 : bf16
    %51 = vector.broadcast %cst_30 : bf16 to vector<32x35xbf16>
    %c0_31 = arith.constant 0 : index
    %c307 = arith.constant 307 : index
    %52 = vector.load %arg7[%c0_31, %c307] : memref<32x342xbf16, #tpu.memory_space<vmem>>, vector<32x35xbf16>
    tpu.vector_store %arg7[%c0_31, %c307], %51 {strides = array<i32>} : memref<32x342xbf16, #tpu.memory_space<vmem>>, vector<32x35xbf16>,
    %53 = arith.truncf %48 : vector<32x288xf32> to vector<32x288xbf16>
    %c0_32 = arith.constant 0 : index
    %c19_33 = arith.constant 19 : index
    %54 = vector.load %arg7[%c0_32, %c19_33] : memref<32x342xbf16, #tpu.memory_space<vmem>>, vector<32x288xbf16>
    tpu.vector_store %arg7[%c0_32, %c19_33], %53 {strides = array<i32>} : memref<32x342xbf16, #tpu.memory_space<vmem>>, vector<32x288xbf16>,
    %c0_34 = arith.constant 0 : index
    %c0_35 = arith.constant 0 : index
    %55 = vector.load %arg7[%c0_34, %c0_35] : memref<32x342xbf16, #tpu.memory_space<vmem>>, vector<32x288xbf16>
    %c0_36 = arith.constant 0 : index
    %c0_37 = arith.constant 0 : index
    %56 = vector.load %arg8[%c0_36, %c0_37] : memref<288x288xbf16, #tpu.memory_space<vmem>>, vector<32x288xbf16>
    tpu.vector_store %arg8[%c0_36, %c0_37], %55 {strides = array<i32>} : memref<288x288xbf16, #tpu.memory_space<vmem>>, vector<32x288xbf16>,
    %c0_38 = arith.constant 0 : index
    %c1_39 = arith.constant 1 : index
    %57 = vector.load %arg7[%c0_38, %c1_39] : memref<32x342xbf16, #tpu.memory_space<vmem>>, vector<32x288xbf16>
    %c32 = arith.constant 32 : index
    %c0_40 = arith.constant 0 : index
    %58 = vector.load %arg8[%c32, %c0_40] : memref<288x288xbf16, #tpu.memory_space<vmem>>, vector<32x288xbf16>
    tpu.vector_store %arg8[%c32, %c0_40], %57 {strides = array<i32>} : memref<288x288xbf16, #tpu.memory_space<vmem>>, vector<32x288xbf16>,
    %c0_41 = arith.constant 0 : index
    %c2_42 = arith.constant 2 : index
    %59 = vector.load %arg7[%c0_41, %c2_42] : memref<32x342xbf16, #tpu.memory_space<vmem>>, vector<32x288xbf16>
    %c64 = arith.constant 64 : index
    %c0_43 = arith.constant 0 : index
    %60 = vector.load %arg8[%c64, %c0_43] : memref<288x288xbf16, #tpu.memory_space<vmem>>, vector<32x288xbf16>
    tpu.vector_store %arg8[%c64, %c0_43], %59 {strides = array<i32>} : memref<288x288xbf16, #tpu.memory_space<vmem>>, vector<32x288xbf16>,
    %c0_44 = arith.constant 0 : index
    %c18_45 = arith.constant 18 : index
    %61 = vector.load %arg7[%c0_44, %c18_45] : memref<32x342xbf16, #tpu.memory_space<vmem>>, vector<32x288xbf16>
    %c96 = arith.constant 96 : index
    %c0_46 = arith.constant 0 : index
    %62 = vector.load %arg8[%c96, %c0_46] : memref<288x288xbf16, #tpu.memory_space<vmem>>, vector<32x288xbf16>
    tpu.vector_store %arg8[%c96, %c0_46], %61 {strides = array<i32>} : memref<288x288xbf16, #tpu.memory_space<vmem>>, vector<32x288xbf16>,
    %c0_47 = arith.constant 0 : index
    %c19_48 = arith.constant 19 : index
    %63 = vector.load %arg7[%c0_47, %c19_48] : memref<32x342xbf16, #tpu.memory_space<vmem>>, vector<32x288xbf16>
    %c128 = arith.constant 128 : index
    %c0_49 = arith.constant 0 : index
    %64 = vector.load %arg8[%c128, %c0_49] : memref<288x288xbf16, #tpu.memory_space<vmem>>, vector<32x288xbf16>
    tpu.vector_store %arg8[%c128, %c0_49], %63 {strides = array<i32>} : memref<288x288xbf16, #tpu.memory_space<vmem>>, vector<32x288xbf16>,
    %c0_50 = arith.constant 0 : index
    %c20_51 = arith.constant 20 : index
    %65 = vector.load %arg7[%c0_50, %c20_51] : memref<32x342xbf16, #tpu.memory_space<vmem>>, vector<32x288xbf16>
    %c160 = arith.constant 160 : index
    %c0_52 = arith.constant 0 : index
    %66 = vector.load %arg8[%c160, %c0_52] : memref<288x288xbf16, #tpu.memory_space<vmem>>, vector<32x288xbf16>
    tpu.vector_store %arg8[%c160, %c0_52], %65 {strides = array<i32>} : memref<288x288xbf16, #tpu.memory_space<vmem>>, vector<32x288xbf16>,
    %c0_53 = arith.constant 0 : index
    %c36_54 = arith.constant 36 : index
    %67 = vector.load %arg7[%c0_53, %c36_54] : memref<32x342xbf16, #tpu.memory_space<vmem>>, vector<32x288xbf16>
    %c192 = arith.constant 192 : index
    %c0_55 = arith.constant 0 : index
    %68 = vector.load %arg8[%c192, %c0_55] : memref<288x288xbf16, #tpu.memory_space<vmem>>, vector<32x288xbf16>
    tpu.vector_store %arg8[%c192, %c0_55], %67 {strides = array<i32>} : memref<288x288xbf16, #tpu.memory_space<vmem>>, vector<32x288xbf16>,
    %c0_56 = arith.constant 0 : index
    %c37_57 = arith.constant 37 : index
    %69 = vector.load %arg7[%c0_56, %c37_57] : memref<32x342xbf16, #tpu.memory_space<vmem>>, vector<32x288xbf16>
    %c224 = arith.constant 224 : index
    %c0_58 = arith.constant 0 : index
    %70 = vector.load %arg8[%c224, %c0_58] : memref<288x288xbf16, #tpu.memory_space<vmem>>, vector<32x288xbf16>
    tpu.vector_store %arg8[%c224, %c0_58], %69 {strides = array<i32>} : memref<288x288xbf16, #tpu.memory_space<vmem>>, vector<32x288xbf16>,
    %c0_59 = arith.constant 0 : index
    %c38_60 = arith.constant 38 : index
    %71 = vector.load %arg7[%c0_59, %c38_60] : memref<32x342xbf16, #tpu.memory_space<vmem>>, vector<32x288xbf16>
    %c256 = arith.constant 256 : index
    %c0_61 = arith.constant 0 : index
    %72 = vector.load %arg8[%c256, %c0_61] : memref<288x288xbf16, #tpu.memory_space<vmem>>, vector<32x288xbf16>
    tpu.vector_store %arg8[%c256, %c0_61], %71 {strides = array<i32>} : memref<288x288xbf16, #tpu.memory_space<vmem>>, vector<32x288xbf16>,
    %c0_62 = arith.constant 0 : index
    %c0_63 = arith.constant 0 : index
    %73 = vector.load %arg4[%c0_62, %c0_63] : memref<32x288xbf16, #tpu.memory_space<vmem>>, vector<32x288xbf16>
    %c0_64 = arith.constant 0 : index
    %c0_65 = arith.constant 0 : index
    %74 = vector.load %arg8[%c0_64, %c0_65] : memref<288x288xbf16, #tpu.memory_space<vmem>>, vector<288x288xbf16>
    %cst_66 = arith.constant dense<0.000000e+00> : vector<32x288xf32>
    %75 = tpu.matmul %73, %74, %cst_66 {dimension_numbers = #tpu.dot_dimension_numbers<[1], [0], [0], [1], [0, 0, 1, 1], [], []>} : vector<32x288xbf16>, vector<288x288xbf16>, vector<32x288xf32> -> vector<32x288xf32>
    %cst_67 = arith.constant 0.000000e+00 : f32
    %76 = vector.broadcast %cst_67 : f32 to vector<32x288xf32>
    %77 = arith.maximumf %75, %76 : vector<32x288xf32>
    %c0_68 = arith.constant 0 : index
    %c0_69 = arith.constant 0 : index
    %78 = vector.load %arg5[%c0_68, %c0_69] : memref<32x1xf32, #tpu.memory_space<vmem>>, vector<32x1xf32>
    %79 = vector.broadcast %78 : vector<32x1xf32> to vector<32x288xf32>
    %80 = arith.addf %77, %79 : vector<32x288xf32>
    %cst_70 = arith.constant 0.000000e+00 : f32
    %81 = vector.shape_cast %18 : vector<1x288xi1> to vector<1x288xi1>
    %82 = vector.broadcast %81 : vector<1x288xi1> to vector<32x288xi1>
    %83 = vector.broadcast %cst_70 : f32 to vector<32x288xf32>
    %84 = arith.select %82, %80, %83 : vector<32x288xi1>, vector<32x288xf32>
    %c0_71 = arith.constant 0 : index
    %c0_72 = arith.constant 0 : index
    %c0_73 = arith.constant 0 : index
    %85 = vector.load %arg6[%c0_71, %c0_72, %c0_73] : memref<1x32x288xf32, #tpu.memory_space<vmem>>, vector<1x32x288xf32>
    %86 = vector.shape_cast %85 : vector<1x32x288xf32> to vector<32x288xf32>
    %87 = vector.shape_cast %84 : vector<32x288xf32> to vector<1x32x288xf32>
    tpu.vector_store %arg6[%c0_71, %c0_72, %c0_73], %87 {strides = array<i32>} : memref<1x32x288xf32, #tpu.memory_space<vmem>>, vector<1x32x288xf32>,
    return
  }
  func.func @transform_0(%arg0: i32) -> (i32, i32, i32) {
    %c0_i32 = arith.constant 0 : i32
    %c0_i32_0 = arith.constant 0 : i32
    %c0_i32_1 = arith.constant 0 : i32
    return %arg0, %c0_i32, %c0_i32_0 : i32, i32, i32
  }
  func.func @transform_1(%arg0: i32) -> (i32, i32) {
    %c0_i32 = arith.constant 0 : i32
    %c0_i32_0 = arith.constant 0 : i32
    %c0_i32_1 = arith.constant 0 : i32
    return %c0_i32, %c0_i32_0 : i32, i32
  }
  func.func @transform_2(%arg0: i32) -> (i32, i32) {
    %c0_i32 = arith.constant 0 : i32
    %c0_i32_0 = arith.constant 0 : i32
    %c0_i32_1 = arith.constant 0 : i32
    return %c0_i32, %c0_i32_0 : i32, i32
  }
  func.func @transform_3(%arg0: i32) -> (i32, i32) {
    %c0_i32 = arith.constant 0 : i32
    %c0_i32_0 = arith.constant 0 : i32
    %c0_i32_1 = arith.constant 0 : i32
    return %c0_i32, %c0_i32_0 : i32, i32
  }
  func.func @transform_4(%arg0: i32) -> (i32, i32) {
    %c0_i32 = arith.constant 0 : i32
    %c0_i32_0 = arith.constant 0 : i32
    %c0_i32_1 = arith.constant 0 : i32
    return %c0_i32, %c0_i32_0 : i32, i32
  }
  func.func @transform_5(%arg0: i32) -> (i32, i32, i32) {
    %c0_i32 = arith.constant 0 : i32
    %c0_i32_0 = arith.constant 0 : i32
    %c0_i32_1 = arith.constant 0 : i32
    return %arg0, %c0_i32, %c0_i32_0 : i32, i32, i32
  }
}

</mosaic_0001>

<bundles_post_ra>
// kernel: _lambda_.1
= control target key start
LH: loop header
LB: loop body
LE: loop exit
PB: predicated region body
PF: predicated region fallthrough
CT: control target
= control target key end

     0   :  { %s1623_s18 = smov 0   ;;  %s2041_s0 = inlined_call_operand.vmem [shape: bf16[2,4,342], index: 0, kind: input, shape index: {}]   ;;  %s2042_s1 = inlined_call_operand.vmem [shape: bf16[32,36], index: 1, kind: input, shape index: {}]   ;;  %s2043_s2 = inlined_call_operand.vmem [shape: f32[32,1], index: 2, kind: input, shape index: {}]   ;;  %s2044_s3 = inlined_call_operand.vmem [shape: bf16[32,288], index: 3, kind: input, shape index: {}]   ;;  %s2045_s4 = inlined_call_operand.vmem [shape: f32[32,1], index: 4, kind: input, shape index: {}]   ;;  %s2046_s5 = inlined_call_operand.vmem [shape: f32[2,32,288], index: 5, kind: output, shape index: {}]  }
   0x1 LB: > { %s1443_s19 = sadd.s32 4294967295, %s1580_s18   ;;  %p1447_p0 = scmp.ge.s32.totalorder %s1580_s18, 1  ;;  %s1580_s18 = sphi %s1623_s18, %s15_s18  }
   0x2   : > { %p187_p1 = scmp.lt.s32.totalorder %s1580_s18, 3 }
   0x4   : > { %p188_p2 = pnand %p1447_p0, %p187_p1 }
   0x5   : > { %p215_p3 = scmp.lt.s32.totalorder (!%p188_p2), %s1443_s19, 1  ;;  %v226_v0 = vlaneseq (!%p188_p2)  ;;  %v1582_v1 = vmov (!%p188_p2), 1983009808   ;;  %s1583_s24 = smov (!%p188_p2), 126   ;;  %v1670_v17 = vld [vmem:[%s2042_s1] sm:$0xff] (!%p188_p2)   ;;  %vm448_vm0 = vcmask (!%p188_p2), 293888  }
   0x6   : > { %191 = sbr.rel (%p188_p2) target bundleno = 982 (0x3d6), region = 40  ;;  %v285_v2 = vunpack.c.l.s4 (!%p188_p2), %v1582_v1  ;;  %s1584_s25 = smov (!%p188_p2), 127   ;;  %1512 = vmatprep.mubr.msk.bf16.mxu1 (!%p188_p2), %vm448_vm0, %v1670_v17  ;;  %v1589_v18 = vmov (!%p188_p2), 0   ;;  %v579_v19 = vld [vmem:[%s2043_s2 + $0x8] sm:$0xff] (!%p188_p2)  ;;  %v578_v20 = vld [vmem:[%s2043_s2] sm:$0xff] (!%p188_p2)  ;;  %v580_v21 = vld [vmem:[%s2043_s2 + $0x10] sm:$0xff] (!%p188_p2) }
   0x7   : > { %v288_v3 = vshrl.u32 (!%p188_p2), %v226_v0, 7  ;;  %s1585_s26 = smov (!%p188_p2), 110   ;;  %s1586_s27 = smov (!%p188_p2), 109   ;;  %496 = vmatprep.mubr.bf16.mxu0 (!%p188_p2), %v1589_v18  ;;  %1561 = vset.pattern.permute.xlu1 (!%p188_p2), %v1589_v18  ;;  %v581_v22 = vld [vmem:[%s2043_s2 + $0x18] sm:$0xff] (!%p188_p2)  ;;  %vm314_vm1 = vcmask (!%p188_p2), 1039360   ;;  %vm383_vm2 = vcmask (!%p188_p2), 1041408  }
   0x8   : > { %v286_v4 = vunpack.c.0.s8 (!%p188_p2), %v285_v2  ;;  %s1587_s28 = smov (!%p188_p2), 108   ;;  %s1588_s29 = smov (!%p188_p2), 92   ;;  %1560 = vset.pattern.permute.xlu0 (!%p188_p2), %v1589_v18  ;;  %vm335_vm3 = vcmask (!%p188_p2), 900096   ;;  %vm325_vm4 = vcmask (!%p188_p2), 1031168   ;;  %vm400_vm5 = vcmask (!%p188_p2), 1045504  }
   0x9   : > { %s1590_s7 = smov (!%p188_p2), 91   ;;  %s1591_s8 = smov (!%p188_p2), 90   ;;  %vm393_vm6 = vcmask (!%p188_p2), 1043456   ;;  %vm2049_vm7 = vcmask (!%p188_p2), 883712   ;;  %vm2048_vm8 = vcmask (!%p188_p2), 752640   ;;  %vm344_vm9 = vcmask (!%p188_p2), 891904  }
   0xa   : > { %v289_v5 = vsub.s32 (!%p188_p2), %v286_v4, %v288_v3  ;;  %vm2047_vm10 = vcmask (!%p188_p2), 744448   ;;  %vm380_vm11 = vcmask (!%p188_p2), 736256   ;;  %s1592_s21 = smov (!%p188_p2), 19  }
   0xd   : > { %s2075_s19 = smov (!%p215_p3, %s1443_s19), 1 }
   0xe   : > { %s1533_s20 = smul.u32 6, %s2075_s19 }
   0xf   : > { %s1534_s17 = smul.u32 96, %s2075_s19 }
  0x10   : > { %s219_s23 = scalar_lea.vmem %s2041_s0, %s1533_s20 }
  0x11   : > { %v281_v6 = vld [vmem:[%s219_s23] sm:$0x3f]  ;;  %s1987_s22 = scalar_lea.vmem %s2046_s5, %s1534_s17 }
  0x12   : > { %v1638_v7 = vrot.slane %v281_v6, %v289_v5  ;;  %v299_v8 = vcombine.low %v281_v6, %v281_v6  ;;  %v283_v10 = vcombine.high %v281_v6, %v281_v6 }
  0x14   : > { %321 = vrot.lane.b32.xlu1 %v1638_v7, %s1583_s24  ;;  %312 = vrot.lane.b32.xlu0 %v1638_v7, %s1584_s25  ;;  %v306_v9 = vrot.slane %v299_v8, %v289_v5  ;;  %v317_v12 = vcombine.low %v1638_v7, %v1638_v7  ;;  %v297_v13 = vrot.slane %v283_v10, %v289_v5 }
  0x15   : > { %v298_v15 = vcombine.high %v1638_v7, %v1638_v7 }
  0x16   : > { %v307_v11 = vcombine.high %v306_v9, %v306_v9  ;;  %v318_v14 = vcombine.low %v297_v13, %v297_v13  ;;  %v328_v16 = vcombine.low %v306_v9, %v306_v9 }
  0x18   : > { %308 = vrot.lane.b32.xlu1 %v306_v9, %s1584_s25  ;;  %331 = vrot.lane.b32.xlu0 %v306_v9, %s1585_s26 }
  0x1c   : > { %310 = vrot.lane.b32.xlu0 %v307_v11, %s1584_s25  ;;  %319 = vrot.lane.b32.xlu1 %v317_v12, %s1583_s24 }
  0x20   : > { %333 = vrot.lane.b32.xlu1 %v317_v12, %s1585_s26  ;;  %323 = vrot.lane.b32.xlu0 %v318_v14, %s1583_s24 }
  0x24   : > { %340 = vrot.lane.b32.xlu1 %v298_v15, %s1586_s27  ;;  %329 = vrot.lane.b32.xlu0 %v328_v16, %s1585_s26 }
  0x28   : > { %349 = vrot.lane.b32.xlu1 %v307_v11, %s1587_s28  ;;  %342 = vrot.lane.b32.xlu0 %v297_v13, %s1586_s27 }
  0x2c   : > { %338 = vrot.lane.b32.xlu1 %v1638_v7, %s1586_s27  ;;  %351 = vrot.lane.b32.xlu0 %v1638_v7, %s1587_s28 }
  0x30   : > { %358 = vrot.lane.b32.xlu1 %v1638_v7, %s1588_s29  ;;  %347 = vrot.lane.b32.xlu0 %v306_v9, %s1587_s28 }
  0x34   : > { %356 = vrot.lane.b32.xlu1 %v317_v12, %s1588_s29  ;;  %360 = vrot.lane.b32.xlu0 %v318_v14, %s1588_s29 }
  0x38   : > { %369 = vrot.lane.b32.xlu1 %v317_v12, %s1590_s7  ;;  %367 = vrot.lane.b32.xlu0 %v306_v9, %s1590_s7 }
  0x3c   : > { %374 = vrot.lane.b32.xlu1 %v1638_v7, %s1591_s8  ;;  %365 = vrot.lane.b32.xlu0 %v328_v16, %s1590_s7 }
  0x40   : > { %378 = vrot.lane.b32.xlu1 %v297_v13, %s1591_s8  ;;  %376 = vrot.lane.b32.xlu0 %v298_v15, %s1591_s8 }
  0x44   : > { %589 = vperm.xlu1 %1561, %v579_v19   ;;  %584 = vperm.xlu0 %1560, %v578_v20  }
  0x48   : > { %594 = vperm.xlu1 %1561, %v580_v21   ;;  %599 = vperm.xlu0 %1560, %v581_v22   ;;  %v1565_v21 = vld [vmem:[%s2042_s1 + $0x8] sm:$0xff]  }
  0x86   : > { %v322_v23 = vpop.permute.xlu1 %321  ;;  %v313_v24 = vpop.permute.xlu0 %312 }
  0x87   : > { %v392_v31 = vsel %vm383_vm2, %v297_v13, %v313_v24 }
  0x8a   : > { %v309_v25 = vpop.permute.xlu1 %308  ;;  %v332_v26 = vpop.permute.xlu0 %331 }
  0x8e   : > { %v311_v27 = vpop.permute.xlu0 %310  ;;  %v320_v28 = vpop.permute.xlu1 %319 }
  0x8f   : > { %v316_v29 = vsel %vm314_vm1, %v311_v27, %v313_v24  ;;  %v315_v30 = vsel %vm314_vm1, %v309_v25, %v311_v27  ;;  %v326_v39 = vsel %vm325_vm4, %v320_v28, %v322_v23 }
  0x90   : > { %v389_v34 = vsel %vm383_vm2, %v298_v15, %v316_v29  ;;  %v386_v38 = vsel %vm383_vm2, %v1638_v7, %v315_v30 }
  0x91   : > { %v395_v46 = vsel %vm393_vm6, %v386_v38, %v326_v39 }
  0x92   : > { %v334_v32 = vpop.permute.xlu1 %333  ;;  %v324_v33 = vpop.permute.xlu0 %323 }
  0x93   : > { %v337_v35 = vsel %vm335_vm3, %v332_v26, %v334_v32  ;;  %v327_v36 = vsel %vm325_vm4, %v322_v23, %v324_v33  ;;  %v399_v37 = vsel %vm393_vm6, %v392_v31, %v324_v33  ;;  %v227_v23 = vand.u32 127, %v226_v0 }
  0x94   : > { %v408_v40 = vsel %vm400_vm5, %v399_v37, %v334_v32  ;;  %v397_v41 = vsel %vm393_vm6, %v389_v34, %v327_v36 }
  0x95   : > { %1506 = vmatprep.subr.bf16.mxu1 %v408_v40  ;;  %v405_v42 = vsel %vm400_vm5, %v397_v41, %v337_v35  ;;  %v229_v24 = vadd.s32 256, %v227_v23  ;;  %v228_v25 = vadd.s32 128, %v227_v23 }
  0x96   : > { %v341_v43 = vpop.permute.xlu1 %340  ;;  %464 = vmatprep.subr.bf16.mxu0 %v405_v42  ;;  %1507 = vmatpush3.bf16.msra.mxu1 %v408_v40  ;;  %v330_v44 = vpop.permute.xlu0 %329  ;;  %v1748_v28 = vmul.u32.u64.low 3817748708, %v227_v23  ;;  %v1749_v29 = vmul.u32.u64.high 3817748708, %v227_v23, %v1748_v28 }
  0x97   : > { %v336_v45 = vsel %vm335_vm3, %v330_v44, %v332_v26  ;;  %v1745_v26 = vmul.u32.u64.low 3817748708, %v229_v24  ;;  %v1746_v27 = vmul.u32.u64.high 3817748708, %v229_v24, %v1745_v26 }
  0x98   : > { %v402_v47 = vsel %vm400_vm5, %v395_v46, %v336_v45  ;;  %v1751_v30 = vmul.u32.u64.low 3817748708, %v228_v25  ;;  %v1752_v31 = vmul.u32.u64.high 3817748708, %v228_v25, %v1751_v30  ;;  %v236_v32 = vshrl.u32 %v1749_v29, 4 }
  0x99   : > { %465 = vmatpush1.bf16.msra.mxu0 %v402_v47 }
  0x9a   : > { %v350_v48 = vpop.permute.xlu1 %349  ;;  %v343_v49 = vpop.permute.xlu0 %342  ;;  %v247_v33 = vshrl.u32 %v1752_v31, 4  ;;  %v237_v35 = vmul.u32 18, %v236_v32 }
  0x9b   : > { %v346_v58 = vsel %vm344_vm9, %v341_v43, %v343_v49 }
  0x9c   : > { %v248_v0 = vmul.u32 18, %v247_v33  ;;  %v238_v37 = vsub.s32 %v227_v23, %v237_v35 }
  0x9e   : > { %v339_v50 = vpop.permute.xlu1 %338  ;;  %v352_v51 = vpop.permute.xlu0 %351  ;;  %v249_v38 = vsub.s32 %v228_v25, %v248_v0  ;;  %vm263_vm14 = vcmp.ne.s32.totalorder %v238_v37, 0  ;;  %vm266_vm15 = vcmp.lt.s32.totalorder %v238_v37, 0  ;;  %v272_v41 = vadd.s32 18, %v238_v37 }
  0x9f   : > { %v355_v56 = vsel %vm2049_vm7, %v350_v48, %v352_v51  ;;  %v418_v59 = vsel %vm383_vm2, %v343_v49, %v352_v51  ;;  %v345_v7 = vsel %vm344_vm9, %v339_v50, %v341_v43 }
  0xa0   : > { %v415_v60 = vsel %vm383_vm2, %v346_v58, %v355_v56  ;;  %v273_v45 = vadd.s32 18, %v249_v38 }
  0xa2   : > { %v359_v52 = vpop.permute.xlu1 %358  ;;  %v348_v53 = vpop.permute.xlu0 %347 }
  0xa3   : > { %v354_v1 = vsel %vm2049_vm7, %v348_v53, %v350_v48  ;;  %vm635_vm7 = vcmask 703896  }
  0xa4   : > { %v412_v8 = vsel %vm383_vm2, %v345_v7, %v354_v1  ;;  %636 = vst.msk [vmem:[#allocation2 + $0x10] sm:$0xff] %vm635_vm7, %v1589_v18  ;;  %637 = vst.msk [vmem:[#allocation2 + $0x28] sm:$0xff] %vm635_vm7, %v1589_v18 }
  0xa6   : > { %v357_v54 = vpop.permute.xlu1 %356  ;;  %v361_v55 = vpop.permute.xlu0 %360 }
  0xa7   : > { %v364_v57 = vsel %vm2048_vm8, %v359_v52, %v361_v55  ;;  %v424_v61 = vsel %vm393_vm6, %v418_v59, %v361_v55  ;;  %v363_v5 = vsel %vm2048_vm8, %v357_v54, %v359_v52  ;;  %vm632_vm8 = vcmask 154624  }
  0xa8   : > { %v422_v4 = vsel %vm393_vm6, %v415_v60, %v364_v57  ;;  %v420_v12 = vsel %vm393_vm6, %v412_v8, %v363_v5  ;;  %vm1761_vm6 = vmand %vm266_vm15, %vm263_vm14  ;;  %633 = vst.msk [vmem:[#allocation2] sm:$0xff] %vm632_vm8, %v1589_v18  ;;  %vm673_vm14 = vcmask 1047704   ;;  %vm689_vm15 = vcmask 261120  }
  0xa9   : > { %634 = vst.msk [vmem:[#allocation2 + $0x18] sm:$0xff] %vm632_vm8, %v1589_v18  ;;  %v275_v47 = vsel %vm1761_vm6, %v272_v41, %v238_v37 }
  0xaa   : > { %v370_v62 = vpop.permute.xlu1 %369  ;;  %v368_v63 = vpop.permute.xlu0 %367 }
  0xab   : > { %v373_v2 = vsel %vm2047_vm10, %v368_v63, %v370_v62  ;;  %v432_v3 = vsel %vm400_vm5, %v424_v61, %v370_v62 }
  0xac   : > { %1508 = vmatprep.subr.bf16.mxu1 %v432_v3  ;;  %v429_v6 = vsel %vm400_vm5, %v422_v4, %v373_v2 }
  0xad   : > { %466 = vmatprep.subr.bf16.mxu0 %v429_v6  ;;  %1509 = vmatpush3.bf16.msra.mxu1 %v432_v3 }
  0xae   : > { %v375_v9 = vpop.permute.xlu1 %374  ;;  %v366_v10 = vpop.permute.xlu0 %365 }
  0xaf   : > { %v372_v11 = vsel %vm2047_vm10, %v366_v10, %v368_v63 }
  0xb0   : > { %v426_v13 = vsel %vm400_vm5, %v420_v12, %v372_v11 }
  0xb1   : > { %467 = vmatpush1.bf16.msra.mxu0 %v426_v13 }
  0xb2   : > { %v379_v14 = vpop.permute.xlu1 %378  ;;  %v377_v15 = vpop.permute.xlu0 %376 }
  0xb3   : > { %v381_v16 = vsel %vm380_vm11, %v375_v9, %v377_v15  ;;  %v382_v19 = vsel %vm380_vm11, %v377_v15, %v379_v14  ;;  %1532 = vmatprep.subr.msk.bf16.mxu1 %vm383_vm2, %v379_v14  ;;  %v462_v20 = vsel %vm383_vm2, %v379_v14, 0 }
  0xb4   : > { %1452 = vmatprep.subr.msk.bf16.mxu0 %vm383_vm2, %v382_v19  ;;  %1511 = vmatpush3.bf16.msra.mxu1 %v462_v20  ;;  %v456_v22 = vsel %vm383_vm2, %v381_v16, 0  ;;  %vm267_vm2 = vcmp.lt.s32.totalorder %v249_v38, 0 }
  0xb5   : > { %469 = vmatpush1.bf16.msra.mxu0 %v456_v22 }
  0xb7   : > { %1513 = vmatmul.mubr.msk.bf16.vlgmr.msra.gmra.mrb[0].mxu1 %vm448_vm0, %v1565_v21 }
  0xb8   : > { %1453 = vmatmul.mubr.msk.bf16.vlgmr.msra.gmra.mrb[0].mxu0 %vm448_vm0, %v1670_v17  ;;  %1197 = vmatprep.mubr.bf16.mxu1 %v1589_v18  ;;  %v258_v17 = vshrl.u32 %v1746_v27, 4 }
  0xb9   : > { %506 = vmatprep.mubr.bf16.mxu0 %v1589_v18 }
  0xba   : > { %v259_v34 = vmul.u32 18, %v258_v17 }
  0xbc   : > { %v260_v36 = vsub.s32 %v229_v24, %v259_v34 }
  0xbe   : > { %vm265_vm12 = vcmp.ne.s32.totalorder %v260_v36, 0  ;;  %vm268_vm13 = vcmp.lt.s32.totalorder %v260_v36, 0  ;;  %v274_v43 = vadd.s32 18, %v260_v36 }
  0xbf   : > { %vm1757_vm5 = vmand %vm268_vm13, %vm265_vm12  ;;  %vm1781_vm12 = vcmp.lt.s32.totalorder %v275_v47, 16 }
  0xc0   : > { %1454 = vmatmul.mubr.msk.bf16.gmra.mrb[4].mxu0 %vm448_vm0, %v1565_v21  ;;  %vm264_vm0 = vcmp.ne.s32.totalorder %v249_v38, 0  ;;  %v277_v48 = vsel %vm1757_vm5, %v274_v43, %v260_v36  ;;  %vm2070_vm5 = vcmask 744448  }
  0xc1   : > { %vm1765_vm10 = vmand %vm267_vm2, %vm264_vm0  ;;  %vm1785_vm7 = vcmp.lt.s32.totalorder %v277_v48, 16 }
  0xc2   : > { %v276_v51 = vsel %vm1765_vm10, %v273_v45, %v249_v38  ;;  %vm676_vm10 = vcmask 416768   ;;  %vm2071_vm6 = vmmov %vm2070_vm5 }
  0xc3   : > { %v590_v39 = vpop.permute.xlu1 %589  ;;  %v585_v40 = vpop.permute.xlu0 %584  ;;  %vm1789_vm13 = vcmp.lt.s32.totalorder %v276_v51, 16 }
  0xc7   : > { %v595_v49 = vpop.permute.xlu1 %594  ;;  %v600_v52 = vpop.permute.xlu0 %599 }
 0x18a   : > { %v1514_v50 = vpop.f32.mrb[0].mxu1 }
 0x18b   : > { %v574_v53 = vmax.f32 %v1514_v50, 0.0  ;;  %v498_v54 = vpop.f32.mrb[0].mxu0  ;;  %v551_v55 = vpop.f32.mrb[1].mxu1 }
 0x18c   : > { %v566_v57 = vmax.f32 %v498_v54, 0.0  ;;  %v568_v59 = vmax.f32 %v551_v55, 0.0  ;;  %v500_v60 = vpop.f32.mrb[1].mxu0  ;;  %v1515_v61 = vpop.f32.mrb[2].mxu1 }
 0x18d   : > { %v610_v62 = vadd.f32 %v595_v49, %v574_v53  ;;  %v567_v1 = vmax.f32 %v500_v60, 0.0  ;;  %v577_v2 = vmax.f32 %v1515_v61, 0.0  ;;  %v502_v3 = vpop.f32.mrb[2].mxu0  ;;  %v554_v4 = vpop.f32.mrb[3].mxu1 }
 0x18e   : > { %v602_v5 = vadd.f32 %v585_v40, %v566_v57  ;;  %v604_v6 = vadd.f32 %v585_v40, %v568_v59  ;;  %v569_v7 = vmax.f32 %v502_v3, 0.0  ;;  %v571_v8 = vmax.f32 %v554_v4, 0.0  ;;  %v504_v9 = vpop.f32.mrb[3].mxu0  ;;  %v1331_v3 = vld [vmem:[%s2045_s4 + $0x18] sm:$0xff]  ;;  %v1330_v4 = vld [vmem:[%s2045_s4 + $0x10] sm:$0xff] }
 0x18f   : > { %v603_v10 = vadd.f32 %v585_v40, %v567_v1  ;;  %v570_v11 = vmax.f32 %v504_v9, 0.0  ;;  %v613_v12 = vadd.f32 %v600_v52, %v577_v2  ;;  %v628_v20 = vsel %vm1785_vm7, %v610_v62, 0.0  ;;  %v1880_v62 = vld [vmem:[%s2044_s3 + $0x4] ss:$12 sps:$4 sm:$0xff]   ;;  %v1329_v1 = vld [vmem:[%s2045_s4 + $0x8] sm:$0xff] }
 0x190   : > { %v620_v13 = vsel %vm1781_vm12, %v602_v5, 0.0  ;;  %v605_v14 = vadd.f32 %v590_v39, %v569_v7  ;;  %v607_v15 = vadd.f32 %v590_v39, %v571_v8  ;;  %v622_v22 = vsel %vm1785_vm7, %v604_v6, 0.0  ;;  %1144 = vmatprep.mubr.bf16.mxu0 %v1880_v62  ;;  %v1328_v2 = vld [vmem:[%s2045_s4] sm:$0xff] }
 0x191   : > { %v621_v16 = vsel %vm1789_vm13, %v603_v10, 0.0  ;;  %v606_v19 = vadd.f32 %v590_v39, %v570_v11  ;;  %v631_v21 = vsel %vm1785_vm7, %v613_v12, 0.0 }
 0x192   : > { %v623_v23 = vsel %vm1781_vm12, %v605_v14, 0.0  ;;  %v625_v24 = vsel %vm1785_vm7, %v607_v15, 0.0  ;;  %v643_v25 = vpack.c.bf16 %v631_v21, %v628_v20 }
 0x193   : > { %v624_v26 = vsel %vm1789_vm13, %v606_v19, 0.0  ;;  %v508_v27 = vpop.f32.mrb[4].mxu0  ;;  %v640_v28 = vpack.c.bf16 %v625_v24, %v622_v22  ;;  %v638_v29 = vpack.c.bf16 %v623_v23, %v620_v13 }
 0x194   : > { %v572_v30 = vmax.f32 %v508_v27, 0.0  ;;  %v510_v31 = vpop.f32.mrb[5].mxu0  ;;  %v639_v17 = vpack.c.bf16 %v624_v26, %v621_v16 }
 0x195   : > { %v573_v32 = vmax.f32 %v510_v31, 0.0  ;;  %v512_v33 = vpop.f32.mrb[6].mxu0  ;;  %654 = vrot.lane.b32.xlu1 %v640_v28, %s1592_s21 }
 0x196   : > { %v608_v34 = vadd.f32 %v595_v49, %v572_v30  ;;  %v575_v35 = vmax.f32 %v512_v33, 0.0  ;;  %v514_v0 = vpop.f32.mrb[7].mxu0  ;;  %652 = vrot.lane.b32.xlu0 %v639_v17, %s1592_s21 }
 0x197   : > { %v609_v36 = vadd.f32 %v595_v49, %v573_v32  ;;  %v576_v37 = vmax.f32 %v514_v0, 0.0 }
 0x198   : > { %v611_v38 = vadd.f32 %v600_v52, %v575_v35  ;;  %v626_v40 = vsel %vm1781_vm12, %v608_v34, 0.0 }
 0x199   : > { %v612_v39 = vadd.f32 %v600_v52, %v576_v37  ;;  %650 = vrot.lane.b32.xlu1 %v638_v29, %s1592_s21  ;;  %v627_v42 = vsel %vm1789_vm13, %v609_v36, 0.0 }
 0x19a   : > { %v629_v41 = vsel %vm1781_vm12, %v611_v38, 0.0 }
 0x19b   : > { %v630_v43 = vsel %vm1789_vm13, %v612_v39, 0.0  ;;  %v641_v44 = vpack.c.bf16 %v629_v41, %v626_v40 }
 0x19c   : > { %v642_v45 = vpack.c.bf16 %v630_v43, %v627_v42 }
 0x19d   : > { %656 = vrot.lane.b32.xlu0 %v641_v44, %s1592_s21 }
 0x19e   : > { %658 = vrot.lane.b32.xlu1 %v642_v45, %s1592_s21 }
 0x1a1   : > { %660 = vrot.lane.b32.xlu0 %v643_v25, %s1592_s21 }
 0x207   : > { %v655_v46 = vpop.permute.xlu1 %654 }
 0x208   : > { %v653_v47 = vpop.permute.xlu0 %652 }
 0x209   : > { %v664_v48 = vsel %vm632_vm8, %v653_v47, %v655_v46 }
 0x20a   : > { %677 = vst.msk [vmem:[#allocation2 + $0x10] sm:$0xff] %vm676_vm10, %v664_v48 }
 0x20b   : > { %v651_v49 = vpop.permute.xlu1 %650 }
 0x20c   : > { %v1820_v50 = vsel %vm632_vm8, %v651_v49, %v653_v47  ;;  %674 = vst.msk [vmem:[#allocation2] sm:$0xff] %vm673_vm14, %v651_v49  ;;  %v1930_v49 = vld [vmem:[%s2044_s3 + $0x8] ss:$12 sps:$4 sm:$0xff]  }
 0x20d   : > { %1112 = vmatprep.subr.bf16.mxu0 %v1820_v50 }
 0x20f   : > { %v657_v51 = vpop.permute.xlu0 %656 }
 0x210   : > { %678 = vst.msk [vmem:[#allocation2 + $0x18] sm:$0xff] %vm673_vm14, %v657_v51  ;;  %v659_v52 = vpop.permute.xlu1 %658  ;;  %vm2073_vm14 = vmmov %vm2070_vm5 }
 0x211   : > { %v683_v53 = vld [vmem:[#allocation2 + $0x10] sm:$0xff]  ;;  %v665_v54 = vsel %vm632_vm8, %v657_v51, %v659_v52 }
 0x212   : > { %690 = vst.msk [vmem:[#allocation3 + $0x10] sm:$0xff] %vm689_vm15, %v683_v53 }
 0x213   : > { %v681_v55 = vld [vmem:[#allocation2] sm:$0xff]  ;;  %v661_v57 = vpop.permute.xlu0 %660 }
 0x214   : > { %v666_v59 = vsel %vm632_vm8, %v659_v52, %v661_v57  ;;  %706 = vrot.lane.b32.xlu1 %v681_v55, %s1584_s25  ;;  %986 = vrot.lane.b32.xlu0 %v681_v55, %s1591_s8 }
 0x215   : > { %680 = vst.msk [vmem:[#allocation2 + $0x28] sm:$0xff] %vm676_vm10, %v666_v59  ;;  %1113 = vmatpush1.bf16.msra.mxu0 %v681_v55  ;;  %vm2072_vm10 = vmmov %vm2070_vm5 }
 0x216   : > { %1114 = vmatprep.subr.bf16.mxu0 %v665_v54 }
 0x217   : > { %v684_v60 = vld [vmem:[#allocation2 + $0x18] sm:$0xff] }
 0x218   : > { %746 = vrot.lane.b32.xlu1 %v681_v55, %s1583_s24  ;;  %826 = vrot.lane.b32.xlu0 %v681_v55, %s1586_s27 }
 0x219   : > { %1115 = vmatpush1.bf16.msra.mxu0 %v684_v60 }
 0x21c   : > { %v686_v61 = vld [vmem:[#allocation2 + $0x28] sm:$0xff]  ;;  %786 = vrot.lane.b32.xlu1 %v681_v55, %s1585_s26  ;;  %710 = vrot.lane.b32.xlu0 %v683_v53, %s1584_s25 }
 0x21d   : > { %693 = vst.msk [vmem:[#allocation3 + $0x28] sm:$0xff] %vm689_vm15, %v686_v61 }
 0x220   : > { %750 = vrot.lane.b32.xlu0 %v683_v53, %s1583_s24  ;;  %708 = vrot.lane.b32.xlu1 %v1820_v50, %s1584_s25 }
 0x224   : > { %990 = vrot.lane.b32.xlu0 %v683_v53, %s1591_s8  ;;  %748 = vrot.lane.b32.xlu1 %v1820_v50, %s1583_s24 }
 0x228   : > { %790 = vrot.lane.b32.xlu0 %v683_v53, %s1585_s26  ;;  %988 = vrot.lane.b32.xlu1 %v1820_v50, %s1591_s8 }
 0x22c   : > { %830 = vrot.lane.b32.xlu0 %v683_v53, %s1586_s27  ;;  %788 = vrot.lane.b32.xlu1 %v1820_v50, %s1585_s26 }
 0x230   : > { %828 = vrot.lane.b32.xlu1 %v1820_v50, %s1586_s27  ;;  %712 = vrot.lane.b32.xlu0 %v684_v60, %s1584_s25 }
 0x234   : > { %870 = vrot.lane.b32.xlu1 %v683_v53, %s1587_s28  ;;  %992 = vrot.lane.b32.xlu0 %v684_v60, %s1591_s8 }
 0x238   : > { %752 = vrot.lane.b32.xlu1 %v684_v60, %s1583_s24  ;;  %714 = vrot.lane.b32.xlu0 %v665_v54, %s1584_s25 }
 0x23c   : > { %792 = vrot.lane.b32.xlu1 %v684_v60, %s1585_s26  ;;  %756 = vrot.lane.b32.xlu0 %v686_v61, %s1583_s24 }
 0x240   : > { %996 = vrot.lane.b32.xlu0 %v686_v61, %s1591_s8  ;;  %716 = vrot.lane.b32.xlu1 %v686_v61, %s1584_s25 }
 0x244   : > { %866 = vrot.lane.b32.xlu0 %v681_v55, %s1587_s28  ;;  %754 = vrot.lane.b32.xlu1 %v665_v54, %s1583_s24 }
 0x248   : > { %906 = vrot.lane.b32.xlu0 %v681_v55, %s1588_s29  ;;  %994 = vrot.lane.b32.xlu1 %v665_v54, %s1591_s8 }
 0x24c   : > { %796 = vrot.lane.b32.xlu0 %v686_v61, %s1585_s26  ;;  %832 = vrot.lane.b32.xlu1 %v684_v60, %s1586_s27 }
 0x250   : > { %836 = vrot.lane.b32.xlu0 %v686_v61, %s1586_s27  ;;  %794 = vrot.lane.b32.xlu1 %v665_v54, %s1585_s26 }
 0x254   : > { %834 = vrot.lane.b32.xlu0 %v665_v54, %s1586_s27  ;;  %868 = vrot.lane.b32.xlu1 %v1820_v50, %s1587_s28 }
 0x258   : > { %876 = vrot.lane.b32.xlu0 %v686_v61, %s1587_s28  ;;  %910 = vrot.lane.b32.xlu1 %v683_v53, %s1588_s29 }
 0x25c   : > { %874 = vrot.lane.b32.xlu0 %v665_v54, %s1587_s28  ;;  %872 = vrot.lane.b32.xlu1 %v684_v60, %s1587_s28 }
 0x260   : > { %916 = vrot.lane.b32.xlu0 %v686_v61, %s1588_s29  ;;  %908 = vrot.lane.b32.xlu1 %v1820_v50, %s1588_s29 }
 0x264   : > { %914 = vrot.lane.b32.xlu0 %v665_v54, %s1588_s29  ;;  %950 = vrot.lane.b32.xlu1 %v683_v53, %s1590_s7  ;;  %v1024_v53 = vld [vmem:[#allocation3 + $0x10] sm:$0xff] }
 0x268   : > { %956 = vrot.lane.b32.xlu0 %v686_v61, %s1590_s7  ;;  %912 = vrot.lane.b32.xlu1 %v684_v60, %s1588_s29 }
 0x26c   : > { %946 = vrot.lane.b32.xlu0 %v681_v55, %s1590_s7  ;;  %948 = vrot.lane.b32.xlu1 %v1820_v50, %s1590_s7 }
 0x270   : > { %952 = vrot.lane.b32.xlu0 %v684_v60, %s1590_s7  ;;  %954 = vrot.lane.b32.xlu1 %v665_v54, %s1590_s7  ;;  %v1942_v60 = vld [vmem:[%s2044_s3 + $0x20] ss:$12 sps:$4 sm:$0xff]  }
 0x274   : > { %1339 = vperm.xlu0 %1560, %v1329_v1   ;;  %1334 = vperm.xlu1 %1561, %v1328_v2  }
 0x278   : > { %1349 = vperm.xlu0 %1560, %v1331_v3   ;;  %1344 = vperm.xlu1 %1561, %v1330_v4  }
 0x286   : > { %v707_v5 = vpop.permute.xlu1 %706  ;;  %v987_v6 = vpop.permute.xlu0 %986 }
 0x28a   : > { %v747_v7 = vpop.permute.xlu1 %746  ;;  %v827_v8 = vpop.permute.xlu0 %826 }
 0x28e   : > { %v787_v9 = vpop.permute.xlu1 %786  ;;  %v711_v10 = vpop.permute.xlu0 %710 }
 0x28f   : > { %730 = vst.msk [vmem:[#allocation3 + $0x40] sm:$0xff] %vm689_vm15, %v711_v10 }
 0x292   : > { %v709_v11 = vpop.permute.xlu1 %708  ;;  %v751_v12 = vpop.permute.xlu0 %750 }
 0x293   : > { %v718_v13 = vsel %vm314_vm1, %v707_v5, %v709_v11  ;;  %v719_v14 = vsel %vm314_vm1, %v709_v11, %v711_v10  ;;  %770 = vst.msk [vmem:[#allocation3 + $0x70] sm:$0xff] %vm689_vm15, %v751_v12 }
 0x294   : > { %1116 = vmatprep.subr.bf16.mxu0 %v719_v14 }
 0x295   : > { %1117 = vmatpush1.bf16.msra.mxu0 %v718_v13 }
 0x296   : > { %v749_v15 = vpop.permute.xlu1 %748  ;;  %v991_v16 = vpop.permute.xlu0 %990  ;;  %v1030_v13 = vld [vmem:[#allocation3 + $0x40] sm:$0xff] }
 0x297   : > { %v758_v19 = vsel %vm325_vm4, %v747_v7, %v749_v15  ;;  %v759_v20 = vsel %vm325_vm4, %v749_v15, %v751_v12  ;;  %1010 = vst.msk [vmem:[#allocation3 + $0x190] sm:$0xff] %vm689_vm15, %v991_v16 }
 0x29a   : > { %v989_v21 = vpop.permute.xlu1 %988  ;;  %v791_v22 = vpop.permute.xlu0 %790 }
 0x29b   : > { %v998_v23 = vsel %vm380_vm11, %v987_v6, %v989_v21  ;;  %v999_v24 = vsel %vm380_vm11, %v989_v21, %v991_v16  ;;  %810 = vst.msk [vmem:[#allocation3 + $0xa0] sm:$0xff] %vm689_vm15, %v791_v22 }
 0x29c   : > { %1165 = vmatprep.subr.bf16.mxu1 %v999_v24 }
 0x29d   : > { %1166 = vmatpush1.bf16.msra.mxu1 %v998_v23 }
 0x29e   : > { %v789_v25 = vpop.permute.xlu1 %788  ;;  %v831_v26 = vpop.permute.xlu0 %830 }
 0x29f   : > { %v798_v27 = vsel %vm335_vm3, %v787_v9, %v789_v25  ;;  %v799_v28 = vsel %vm335_vm3, %v789_v25, %v791_v22  ;;  %850 = vst.msk [vmem:[#allocation3 + $0xd0] sm:$0xff] %vm689_vm15, %v831_v26 }
 0x2a2   : > { %v829_v29 = vpop.permute.xlu1 %828  ;;  %v713_v30 = vpop.permute.xlu0 %712 }
 0x2a3   : > { %v838_v31 = vsel %vm344_vm9, %v827_v8, %v829_v29  ;;  %v839_v17 = vsel %vm344_vm9, %v829_v29, %v831_v26  ;;  %v1027_v8 = vld [vmem:[#allocation3 + $0x28] sm:$0xff]  ;;  %v1036_v26 = vld [vmem:[#allocation3 + $0x70] sm:$0xff] }
 0x2a6   : > { %v871_v32 = vpop.permute.xlu1 %870  ;;  %v993_v33 = vpop.permute.xlu0 %992  ;;  %v1048_v50 = vld [vmem:[#allocation3 + $0xd0] sm:$0xff] }
 0x2a7   : > { %890 = vst.msk [vmem:[#allocation3 + $0x100] sm:$0xff] %vm689_vm15, %v871_v32 }
 0x2aa   : > { %v753_v34 = vpop.permute.xlu1 %752  ;;  %v715_v35 = vpop.permute.xlu0 %714 }
 0x2ab   : > { %v720_v0 = vsel %vm314_vm1, %v713_v30, %v715_v35 }
 0x2ae   : > { %v793_v36 = vpop.permute.xlu1 %792  ;;  %v757_v37 = vpop.permute.xlu0 %756  ;;  %v1054_v9 = vld [vmem:[#allocation3 + $0x100] sm:$0xff] }
 0x2af   : > { %773 = vst.msk [vmem:[#allocation3 + $0x88] sm:$0xff] %vm689_vm15, %v757_v37 }
 0x2b2   : > { %v717_v38 = vpop.permute.xlu1 %716  ;;  %v997_v39 = vpop.permute.xlu0 %996 }
 0x2b3   : > { %v721_v40 = vsel %vm314_vm1, %v715_v35, %v717_v38  ;;  %733 = vst.msk [vmem:[#allocation3 + $0x58] sm:$0xff] %vm689_vm15, %v717_v38  ;;  %1013 = vst.msk [vmem:[#allocation3 + $0x1a8] sm:$0xff] %vm689_vm15, %v997_v39  ;;  %vm2062_vm1 = vcmask 883712  }
 0x2b4   : > { %1118 = vmatprep.subr.bf16.mxu0 %v721_v40  ;;  %vm2065_vm8 = vmmov %vm2062_vm1 }
 0x2b5   : > { %1119 = vmatpush1.bf16.msra.mxu0 %v720_v0  ;;  %v1042_v0 = vld [vmem:[#allocation3 + $0xa0] sm:$0xff] }
 0x2b6   : > { %v755_v41 = vpop.permute.xlu1 %754  ;;  %v867_v42 = vpop.permute.xlu0 %866  ;;  %1120 = vmatprep.subr.bf16.mxu0 %v759_v20 }
 0x2b7   : > { %v760_v43 = vsel %vm325_vm4, %v753_v34, %v755_v41  ;;  %v761_v44 = vsel %vm325_vm4, %v755_v41, %v757_v37  ;;  %vm2063_vm4 = vmmov %vm2062_vm1 }
 0x2b9   : > { %1121 = vmatpush1.bf16.msra.mxu0 %v758_v19 }
 0x2ba   : > { %v995_v45 = vpop.permute.xlu1 %994  ;;  %v907_v46 = vpop.permute.xlu0 %906  ;;  %1122 = vmatprep.subr.bf16.mxu0 %v761_v44  ;;  %v1033_v21 = vld [vmem:[#allocation3 + $0x58] sm:$0xff] }
 0x2bb   : > { %v1000_v47 = vsel %vm380_vm11, %v993_v33, %v995_v45  ;;  %v1001_v48 = vsel %vm380_vm11, %v995_v45, %v997_v39  ;;  %v1571_v44 = vld [vmem:[%s2044_s3 + $0x1c] ss:$12 sps:$4 sm:$0xff]  }
 0x2bc   : > { %1167 = vmatprep.subr.bf16.mxu1 %v1001_v48  ;;  %v1075_v45 = vld [vmem:[#allocation3 + $0x1a8] sm:$0xff] }
 0x2bd   : > { %1123 = vmatpush1.bf16.msra.mxu0 %v760_v43  ;;  %1168 = vmatpush1.bf16.msra.mxu1 %v1000_v47  ;;  %v1072_v43 = vld [vmem:[#allocation3 + $0x190] sm:$0xff] }
 0x2be   : > { %v833_v51 = vpop.permute.xlu1 %832  ;;  %v797_v52 = vpop.permute.xlu0 %796  ;;  %1124 = vmatprep.subr.bf16.mxu0 %v799_v28  ;;  %1474 = vmatprep.subr.bf16.mxu1 %v1048_v50 }
 0x2bf   : > { %813 = vst.msk [vmem:[#allocation3 + $0xb8] sm:$0xff] %vm689_vm15, %v797_v52 }
 0x2c0   : > { %1463 = vmatmul.mubr.msk.bf16.vlgmr.msra.gmra.mrb[4].mxu1 %vm689_vm15, %v1930_v49 }
 0x2c1   : > { %1125 = vmatpush1.bf16.msra.mxu0 %v798_v27  ;;  %1475 = vmatpush3.bf16.msra.mxu1 %v1024_v53 }
 0x2c2   : > { %v795_v54 = vpop.permute.xlu1 %794  ;;  %v837_v55 = vpop.permute.xlu0 %836  ;;  %1207 = vmatprep.mubr.bf16.mxu1 %v1589_v18 }
 0x2c3   : > { %v800_v57 = vsel %vm335_vm3, %v793_v36, %v795_v54  ;;  %v801_v59 = vsel %vm335_vm3, %v795_v54, %v797_v52  ;;  %853 = vst.msk [vmem:[#allocation3 + $0xe8] sm:$0xff] %vm689_vm15, %v837_v55  ;;  %vm2064_vm3 = vmmov %vm2062_vm1 }
 0x2c4   : > { %1126 = vmatprep.subr.bf16.mxu0 %v801_v59 }
 0x2c5   : > { %1127 = vmatpush1.bf16.msra.mxu0 %v800_v57 }
 0x2c6   : > { %v869_v61 = vpop.permute.xlu1 %868  ;;  %v835_v1 = vpop.permute.xlu0 %834  ;;  %1128 = vmatprep.subr.bf16.mxu0 %v839_v17  ;;  %v1045_v41 = vld [vmem:[#allocation3 + $0xb8] sm:$0xff] }
 0x2c7   : > { %v878_v2 = vsel %vm2062_vm1, %v867_v42, %v869_v61  ;;  %v879_v18 = vsel %vm2063_vm4, %v869_v61, %v871_v32  ;;  %v840_v3 = vsel %vm344_vm9, %v833_v51, %v835_v1  ;;  %v841_v4 = vsel %vm344_vm9, %v835_v1, %v837_v55  ;;  %v1568_v42 = vld [vmem:[%s2044_s3] ss:$12 sps:$4 sm:$0xff]  }
 0x2c8   : > { %1464 = vmatmul.mubr.msk.bf16.gmra.mrb[8].mxu1 %vm689_vm15, %v1942_v60  ;;  %vm2066_vm9 = vcmask 752640  }
 0x2c9   : > { %1129 = vmatpush1.bf16.msra.mxu0 %v838_v31  ;;  %1250 = vmatprep.mubr.bf16.mxu1 %v1880_v62  ;;  %vm2067_vm11 = vmmov %vm2066_vm9  ;;  %v1039_v31 = vld [vmem:[#allocation3 + $0x88] sm:$0xff] }
 0x2ca   : > { %v911_v5 = vpop.permute.xlu1 %910  ;;  %v877_v6 = vpop.permute.xlu0 %876  ;;  %v1051_v7 = vld [vmem:[#allocation3 + $0xe8] sm:$0xff]  ;;  %1130 = vmatprep.subr.bf16.mxu0 %v841_v4  ;;  %vm2068_vm0 = vmmov %vm2066_vm9 }
 0x2cb   : > { %930 = vst.msk [vmem:[#allocation3 + $0x130] sm:$0xff] %vm689_vm15, %v911_v5  ;;  %893 = vst.msk [vmem:[#allocation3 + $0x118] sm:$0xff] %vm689_vm15, %v877_v6  ;;  %1476 = vmatprep.subr.bf16.mxu1 %v1051_v7 }
 0x2cc   : > { %1477 = vmatpush3.bf16.msra.mxu1 %v1027_v8  ;;  %vm2069_vm2 = vmmov %vm2068_vm0 }
 0x2cd   : > { %1478 = vmatprep.subr.bf16.mxu1 %v1054_v9  ;;  %1131 = vmatpush1.bf16.msra.mxu0 %v840_v3 }
 0x2ce   : > { %v873_v10 = vpop.permute.xlu1 %872  ;;  %v875_v11 = vpop.permute.xlu0 %874  ;;  %1132 = vmatprep.subr.bf16.mxu0 %v879_v18 }
 0x2cf   : > { %v880_v12 = vsel %vm2064_vm3, %v873_v10, %v875_v11  ;;  %v881_v62 = vsel %vm2065_vm8, %v875_v11, %v877_v6 }
 0x2d0   : > { %1479 = vmatpush3.bf16.msra.mxu1 %v1030_v13 }
 0x2d1   : > { %1133 = vmatpush1.bf16.msra.mxu0 %v878_v2 }
 0x2d2   : > { %v909_v14 = vpop.permute.xlu1 %908  ;;  %v917_v15 = vpop.permute.xlu0 %916  ;;  %v1057_v16 = vld [vmem:[#allocation3 + $0x118] sm:$0xff]  ;;  %1134 = vmatprep.subr.bf16.mxu0 %v881_v62  ;;  %v1060_v22 = vld [vmem:[#allocation3 + $0x130] sm:$0xff] }
 0x2d3   : > { %v918_v19 = vsel %vm2066_vm9, %v907_v46, %v909_v14  ;;  %v919_v20 = vsel %vm2067_vm11, %v909_v14, %v911_v5  ;;  %933 = vst.msk [vmem:[#allocation3 + $0x148] sm:$0xff] %vm689_vm15, %v917_v15  ;;  %1480 = vmatprep.subr.bf16.mxu1 %v1057_v16  ;;  %v1573_v46 = vld [vmem:[%s2044_s3 + $0x18] ss:$12 sps:$4 sm:$0xff]  }
 0x2d4   : > { %1481 = vmatpush3.bf16.msra.mxu1 %v1033_v21 }
 0x2d5   : > { %1482 = vmatprep.subr.bf16.mxu1 %v1060_v22  ;;  %1135 = vmatpush1.bf16.msra.mxu0 %v880_v12 }
 0x2d6   : > { %v951_v23 = vpop.permute.xlu1 %950  ;;  %v915_v24 = vpop.permute.xlu0 %914  ;;  %1136 = vmatprep.subr.bf16.mxu0 %v919_v20 }
 0x2d7   : > { %970 = vst.msk [vmem:[#allocation3 + $0x160] sm:$0xff] %vm689_vm15, %v951_v23  ;;  %v921_v25 = vsel %vm2068_vm0, %v915_v24, %v917_v15 }
 0x2d8   : > { %1483 = vmatpush3.bf16.msra.mxu1 %v1036_v26 }
 0x2d9   : > { %1137 = vmatpush1.bf16.msra.mxu0 %v918_v19 }
 0x2da   : > { %v913_v27 = vpop.permute.xlu1 %912  ;;  %v957_v28 = vpop.permute.xlu0 %956  ;;  %v1063_v29 = vld [vmem:[#allocation3 + $0x148] sm:$0xff]  ;;  %1138 = vmatprep.subr.bf16.mxu0 %v921_v25 }
 0x2db   : > { %v920_v30 = vsel %vm2069_vm2, %v913_v27, %v915_v24  ;;  %973 = vst.msk [vmem:[#allocation3 + $0x178] sm:$0xff] %vm689_vm15, %v957_v28  ;;  %1484 = vmatprep.subr.bf16.mxu1 %v1063_v29 }
 0x2dc   : > { %1485 = vmatpush3.bf16.msra.mxu1 %v1039_v31 }
 0x2dd   : > { %1139 = vmatpush1.bf16.msra.mxu0 %v920_v30 }
 0x2de   : > { %v949_v17 = vpop.permute.xlu1 %948  ;;  %v947_v32 = vpop.permute.xlu0 %946  ;;  %v1066_v33 = vld [vmem:[#allocation3 + $0x160] sm:$0xff] }
 0x2df   : > { %v959_v34 = vsel %vm2070_vm5, %v949_v17, %v951_v23  ;;  %v958_v35 = vsel %vm2071_vm6, %v947_v32, %v949_v17  ;;  %1486 = vmatprep.subr.bf16.mxu1 %v1066_v33 }
 0x2e0   : > { %1487 = vmatpush3.bf16.msra.mxu1 %v1042_v0  ;;  %1140 = vmatprep.subr.bf16.mxu0 %v959_v34 }
 0x2e1   : > { %1141 = vmatpush1.bf16.msra.mxu0 %v958_v35 }
 0x2e2   : > { %v955_v36 = vpop.permute.xlu1 %954  ;;  %v953_v37 = vpop.permute.xlu0 %952  ;;  %v1069_v38 = vld [vmem:[#allocation3 + $0x178] sm:$0xff] }
 0x2e3   : > { %v961_v39 = vsel %vm2072_vm10, %v955_v36, %v957_v28  ;;  %v960_v40 = vsel %vm2073_vm14, %v953_v37, %v955_v36  ;;  %1488 = vmatprep.subr.bf16.mxu1 %v1069_v38 }
 0x2e4   : > { %1489 = vmatpush3.bf16.msra.mxu1 %v1045_v41  ;;  %1142 = vmatprep.subr.bf16.mxu0 %v961_v39 }
 0x2e5   : > { %1516 = vmatprep.subr.bf16.mxu1 %v1072_v43  ;;  %1143 = vmatpush1.bf16.msra.mxu0 %v960_v40 }
 0x2e7   : > { %1251 = vmatmul.mubr.bf16.vlgmr.msra.gmra.mrb[12].mxu1 %v1568_v42 }
 0x2e8   : > { %1517 = vmatpush3.bf16.msra.mxu1 %v1072_v43  ;;  %1258 = vmatprep.mubr.bf16.mxu1 %v1571_v44 }
 0x2e9   : > { %1518 = vmatprep.subr.bf16.mxu1 %v1075_v45  ;;  %1145 = vmatmul.mubr.bf16.vlgmr.msra.gmra.mrb[8].mxu0 %v1568_v42 }
 0x2ea   : > { %1154 = vmatprep.mubr.bf16.mxu0 %v1571_v44 }
 0x2ec   : > { %1519 = vmatpush3.bf16.msra.mxu1 %v1075_v45 }
 0x2ef   : > { %1259 = vmatmul.mubr.bf16.gmra.mrb[16].mxu1 %v1573_v46 }
 0x2f0   : > { %1520 = vmatprep.mubr.msk.bf16.mxu1 %vm689_vm15, %v1930_v49 }
 0x2f1   : > { %1155 = vmatmul.mubr.bf16.gmra.mrb[12].mxu0 %v1573_v46 }
 0x2f3   : > { %v1982_v9 = vpop.permute.xlu1 %1334  ;;  %v1990_v13 = vpop.permute.xlu0 %1339 }
 0x2f7   : > { %1521 = vmatmul.mubr.msk.bf16.vlgmr.msra.gmra.mrb[20].mxu1 %vm689_vm15, %v1942_v60  ;;  %v1345_v36 = vpop.permute.xlu1 %1344  ;;  %v1350_v41 = vpop.permute.xlu0 %1349 }
 0x393   : > { %v1199_v47 = vpop.f32.mrb[4].mxu1 }
 0x394   : > { %v1201_v48 = vpop.f32.mrb[5].mxu1 }
 0x395   : > { %v1203_v50 = vpop.f32.mrb[6].mxu1 }
 0x396   : > { %v1205_v51 = vpop.f32.mrb[7].mxu1 }
 0x39b   : > { %v1209_v52 = vpop.f32.mrb[8].mxu1 }
 0x39c   : > { %v1211_v53 = vpop.f32.mrb[9].mxu1 }
 0x39d   : > { %v1213_v54 = vpop.f32.mrb[10].mxu1 }
 0x39e   : > { %v1215_v55 = vpop.f32.mrb[11].mxu1 }
 0x3ba   : > { %v1490_v57 = vpop.f32.mrb[12].mxu1 }
 0x3bb   : > { %v1491_v59 = vpop.f32.mrb[13].mxu1 }
 0x3bc   : > { %v1492_v61 = vadd.f32 %v1491_v59, %v1490_v57  ;;  %v1493_v1 = vpop.f32.mrb[14].mxu1  ;;  %v1146_v2 = vpop.f32.mrb[8].mxu0 }
 0x3bd   : > { %v1494_v18 = vpop.f32.mrb[15].mxu1  ;;  %v1200_v49 = vadd.f32 %v1199_v47, %v1146_v2  ;;  %v1148_v3 = vpop.f32.mrb[9].mxu0 }
 0x3be   : > { %v1980_v4 = vadd.f32 %v1494_v18, %v1493_v1  ;;  %v1202_v60 = vadd.f32 %v1201_v48, %v1148_v3  ;;  %v1150_v5 = vpop.f32.mrb[10].mxu0 }
 0x3bf   : > { %v1316_v6 = vmax.f32 %v1200_v49, 0.0  ;;  %v1204_v7 = vadd.f32 %v1203_v50, %v1150_v5  ;;  %v1152_v8 = vpop.f32.mrb[11].mxu0 }
 0x3c0   : > { %v1317_v10 = vmax.f32 %v1202_v60, 0.0  ;;  %v1206_v11 = vadd.f32 %v1205_v51, %v1152_v8 }
 0x3c1   : > { %v1352_v12 = vadd.f32 %v1982_v9, %v1316_v6  ;;  %v1319_v62 = vmax.f32 %v1204_v7, 0.0 }
 0x3c2   : > { %v1496_v14 = vpop.f32.mrb[16].mxu1  ;;  %v1353_v15 = vadd.f32 %v1982_v9, %v1317_v10  ;;  %v1320_v16 = vmax.f32 %v1206_v11, 0.0 }
 0x3c3   : > { %v1364_v19 = vsel %vm1781_vm12, %v1352_v12, 0.0  ;;  %v1497_v20 = vpop.f32.mrb[17].mxu1  ;;  %v1355_v21 = vadd.f32 %v1990_v13, %v1319_v62 }
 0x3c4   : > { %1376 = vst [vmem:[%s1987_s22] sm:$0xff] %v1364_v19  ;;  %v1365_v22 = vsel %vm1789_vm13, %v1353_v15, 0.0  ;;  %v1498_v23 = vadd.f32 %v1497_v20, %v1496_v14  ;;  %v1499_v24 = vpop.f32.mrb[18].mxu1  ;;  %v1356_v25 = vadd.f32 %v1990_v13, %v1320_v16  ;;  %v1156_v26 = vpop.f32.mrb[12].mxu0 }
 0x3c5   : > { %1377 = vst [vmem:[%s1987_s22 + $0x8] sm:$0xff] %v1365_v22  ;;  %v1367_v27 = vsel %vm1781_vm12, %v1355_v21, 0.0  ;;  %v1500_v28 = vpop.f32.mrb[19].mxu1  ;;  %v1210_v29 = vadd.f32 %v1209_v52, %v1156_v26  ;;  %v1158_v30 = vpop.f32.mrb[13].mxu0 }
 0x3c6   : > { %1379 = vst [vmem:[%s1987_s22 + $0x18] sm:$0xff] %v1367_v27  ;;  %v1368_v31 = vsel %vm1789_vm13, %v1356_v25, 0.0  ;;  %v1501_v17 = vadd.f32 %v1500_v28, %v1499_v24  ;;  %v1212_v32 = vadd.f32 %v1211_v53, %v1158_v30  ;;  %v1160_v33 = vpop.f32.mrb[14].mxu0 }
 0x3c7   : > { %1380 = vst [vmem:[%s1987_s22 + $0x20] sm:$0xff] %v1368_v31  ;;  %v1322_v34 = vmax.f32 %v1210_v29, 0.0  ;;  %v1214_v35 = vadd.f32 %v1213_v54, %v1160_v33  ;;  %v1162_v0 = vpop.f32.mrb[15].mxu0 }
 0x3c8   : > { %v1323_v37 = vmax.f32 %v1212_v32, 0.0  ;;  %v1216_v38 = vadd.f32 %v1215_v55, %v1162_v0 }
 0x3c9   : > { %v1358_v39 = vadd.f32 %v1345_v36, %v1322_v34  ;;  %v1325_v40 = vmax.f32 %v1214_v35, 0.0 }
 0x3ca   : > { %v1522_v42 = vpop.f32.mrb[20].mxu1  ;;  %v1359_v43 = vadd.f32 %v1345_v36, %v1323_v37  ;;  %v1326_v44 = vmax.f32 %v1216_v38, 0.0 }
 0x3cb   : > { %v1370_v45 = vsel %vm1781_vm12, %v1358_v39, 0.0  ;;  %v1310_v46 = vadd.f32 %v1522_v42, %v1498_v23  ;;  %v1301_v47 = vpop.f32.mrb[21].mxu1  ;;  %v1361_v48 = vadd.f32 %v1350_v41, %v1325_v40 }
 0x3cc   : > { %1382 = vst [vmem:[%s1987_s22 + $0x30] sm:$0xff] %v1370_v45  ;;  %v1371_v50 = vsel %vm1789_vm13, %v1359_v43, 0.0  ;;  %v1302_v51 = vadd.f32 %v1492_v61, %v1301_v47  ;;  %v1523_v52 = vpop.f32.mrb[22].mxu1  ;;  %v1362_v53 = vadd.f32 %v1350_v41, %v1326_v44 }
 0x3cd   : > { %v1324_v54 = vmax.f32 %v1310_v46, 0.0  ;;  %1383 = vst [vmem:[%s1987_s22 + $0x38] sm:$0xff] %v1371_v50  ;;  %v1373_v55 = vsel %vm1781_vm12, %v1361_v48, 0.0  ;;  %v1313_v57 = vadd.f32 %v1523_v52, %v1501_v17  ;;  %v1304_v59 = vpop.f32.mrb[23].mxu1 }
 0x3ce   : > { %v1318_v1 = vmax.f32 %v1302_v51, 0.0  ;;  %1385 = vst [vmem:[%s1987_s22 + $0x48] sm:$0xff] %v1373_v55  ;;  %v1374_v2 = vsel %vm1789_vm13, %v1362_v53, 0.0  ;;  %v1305_v61 = vadd.f32 %v1980_v4, %v1304_v59 }
 0x3cf   : > { %v1360_v18 = vadd.f32 %v1345_v36, %v1324_v54  ;;  %v1327_v49 = vmax.f32 %v1313_v57, 0.0  ;;  %1386 = vst [vmem:[%s1987_s22 + $0x50] sm:$0xff] %v1374_v2 }
 0x3d0   : > { %v1354_v3 = vadd.f32 %v1982_v9, %v1318_v1  ;;  %v1321_v60 = vmax.f32 %v1305_v61, 0.0 }
 0x3d1   : > { %v1372_v56 = vsel %vm1785_vm7, %v1360_v18, 0.0  ;;  %v1363_v5 = vadd.f32 %v1350_v41, %v1327_v49 }
 0x3d2   : > { %1384 = vst.msk [vmem:[%s1987_s22 + $0x40] sm:$0xff] %vm689_vm15, %v1372_v56  ;;  %v1366_v6 = vsel %vm1785_vm7, %v1354_v3, 0.0  ;;  %v1357_v63 = vadd.f32 %v1990_v13, %v1321_v60 }
 0x3d3   : > { %1378 = vst.msk [vmem:[%s1987_s22 + $0x10] sm:$0xff] %vm689_vm15, %v1366_v6  ;;  %v1375_v4 = vsel %vm1785_vm7, %v1363_v5, 0.0 }
 0x3d4   : > { %1387 = vst.msk [vmem:[%s1987_s22 + $0x58] sm:$0xff] %vm689_vm15, %v1375_v4  ;;  %v1369_v7 = vsel %vm1785_vm7, %v1357_v63, 0.0 }
 0x3d5   : > { %1381 = vst.msk [vmem:[%s1987_s22 + $0x28] sm:$0xff] %vm689_vm15, %v1369_v7 }
 0x3d6 PF: > { %s15_s18 = sadd.s32 1, %s1580_s18  }
 0x3d7   : > { %p12_p4 = scmp.ge.s32.totalorder %s15_s18, 4  }
 0x3d9   :  { %14 = sbr.rel (!%p12_p4) target bundleno = 1 (0x1), region = 70 }

</bundles_post_ra>
